<compile_context>
chip_gen: v7x
topology: tpu7x:2x2x1
jax: 0.10.0
libtpu: 0.0.40
codegen_flags: <defaults>
</compile_context>

<pallas_src>
import functools

import jax
import jax.numpy as jnp
from jax.experimental import pallas as pl
from jax.experimental.pallas import tpu as pltpu

_LANE = 128     # feature (lane) alignment
_SUBLANE = 8    # batch (sublane) alignment


def _round_up(x, m):
    return ((x + m - 1) // m) * m


def _choose_tm(m_pad, max_width_pad, tm_max):
    """Pick the row tile: minimize padding waste, prefer >=2 (even) grid
    steps for v7x's two TensorCores, cap tm when layers are wide."""
    if max_width_pad >= 2048:
        tm_cap = min(tm_max, 128)
    elif max_width_pad >= 1024:
        tm_cap = min(tm_max, 256)
    else:
        tm_cap = tm_max
    tm_cap = max(_SUBLANE, _round_up(tm_cap, _SUBLANE))

    if m_pad <= tm_cap and m_pad < 256:
        # Batch too small to split usefully; single step, zero extra waste.
        return m_pad

    best, best_cost = None, None
    for t in (128, 256, 512):
        if t > tm_cap:
            continue
        steps = -(-m_pad // t)
        waste = steps * t - m_pad
        cost = (0 if steps >= 2 else 1,   # prefer >=2 steps (v7x: 2 TCs)
                waste,                    # minimize padded rows
                steps % 2,                # prefer an even number of steps
                -t)                       # then the largest tile
        if best_cost is None or cost < best_cost:
            best, best_cost = t, cost
    return best if best is not None else min(tm_cap, m_pad)


def _fused_mlp_kernel(*refs, num_layers, compute_dtype):
    """refs = (x_ref, w0, b0, ..., w_{L-1}, b_{L-1}, o_ref).

    One grid step pushes `tm` batch rows through ALL layers. Weights/biases
    are whole-array VMEM residents (single copy, no double-buffering) and are
    already padded + pre-cast to compute_dtype, so no per-step casts here.
    """
    x_ref = refs[0]
    o_ref = refs[-1]
    wb = refs[1:-1]

    h = x_ref[...]                                   # already compute_dtype
    for i in range(num_layers):
        w = wb[2 * i][...]                           # [K_i, N_i] compute_dtype
        b = wb[2 * i + 1][...]                       # [1, N_i] f32, lane-bcast
        y = jnp.dot(h, w, preferred_element_type=jnp.float32)   # MXU, f32 acc
        y = y + b                                                # f32 VPU
        if i < num_layers - 1:
            h = jnp.maximum(y, 0.0).astype(compute_dtype)        # carry narrow
        else:
            h = y
    o_ref[...] = h.astype(o_ref.dtype)


def prepare_mlp_params(params, compute_dtype=jnp.bfloat16):
    """Pad all feature dims to multiples of 128 and cast weights to the
    compute dtype ONCE (call this at init / load time, not per forward).

    params: list of (w, b) with w: [in, out], b: [1, out] (float32).
    Zero padding is exact: padded weight rows/cols and bias lanes are zero,
    so padded activation lanes stay exactly zero through ReLU.
    """
    prepped = []
    for (w, b) in params:
        k_i, n_i = w.shape
        k_pad = _round_up(k_i, _LANE)
        n_pad = _round_up(n_i, _LANE)
        w_p = jnp.zeros((k_pad, n_pad), compute_dtype).at[:k_i, :n_i].set(
            w.astype(compute_dtype))
        b_p = jnp.zeros((1, n_pad), jnp.float32).at[:, :n_i].set(
            b.astype(jnp.float32).reshape(1, n_i))
        prepped.append((w_p, b_p))
    return prepped


def mlp_forward(x, prepped_params, *, out_size, tm_max=512):
    """Fused y = MLP(x) as a single Pallas call.

    prepped_params: output of prepare_mlp_params (padded, pre-cast).
    out_size: true (unpadded) output width.
    """
    M, K = x.shape
    num_layers = len(prepped_params)
    compute_dtype = prepped_params[0][0].dtype
    out_dtype = x.dtype

    K_pad = prepped_params[0][0].shape[0]
    assert K_pad == _round_up(K, _LANE), "x width inconsistent with params"
    n_out_pad = prepped_params[-1][0].shape[1]
    widths = [K_pad] + [w.shape[1] for (w, _) in prepped_params]
    max_width_pad = max(widths)

    # ---- row tile / grid ----------------------------------------------------
    M_pad0 = _round_up(M, _SUBLANE)
    tm = _choose_tm(M_pad0, max_width_pad, tm_max)
    M_pad = _round_up(M_pad0, tm)

    # ---- pad + cast x (skip the pad copy when already aligned) --------------
    if M_pad == M and K_pad == K:
        x_p = x.astype(compute_dtype)
    else:
        x_p = jnp.zeros((M_pad, K_pad), compute_dtype).at[:M, :K].set(
            x.astype(compute_dtype))

    # ---- BlockSpecs ----------------------------------------------------------
    # x / out: row-tiled, pipelined (default double-buffering).
    # weights / biases: whole-array VMEM residents -> single copy, no
    # double-buffering of grid-invariant operands.
    in_specs = [pl.BlockSpec((tm, K_pad), lambda i: (i, 0))]
    flat_inputs = [x_p]
    resident_spec = pl.BlockSpec(memory_space=pltpu.MemorySpace.VMEM)
    for (w_p, b_p) in prepped_params:
        in_specs.append(resident_spec)
        in_specs.append(resident_spec)
        flat_inputs.extend([w_p, b_p])
    out_specs = pl.BlockSpec((tm, n_out_pad), lambda i: (i, 0))

    # ---- explicit VMEM budget -> vmem_limit_bytes ----------------------------
    compute_isz = jnp.dtype(compute_dtype).itemsize
    out_isz = jnp.dtype(out_dtype).itemsize
    resident_bytes = sum(int(w.size) * w.dtype.itemsize +
                         int(b.size) * b.dtype.itemsize
                         for (w, b) in prepped_params)          # single copy
    stream_bytes = 2 * tm * K_pad * compute_isz + 2 * tm * n_out_pad * out_isz
    inter_bytes = 2 * tm * max_width_pad * 4                    # f32 h/y live
    budget = resident_bytes + stream_bytes + inter_bytes
    # Headroom for compiler-internal scratch; keep below v5e/v6e physical.
    # On v7x (64 MiB physical) models with >~48 MiB of resident weights need
    # the streaming fallback below.
    vmem_limit = int(min(max(budget * 3 // 2 + (4 << 20), 16 << 20), 100 << 20))
    # TODO(synk): weight-streaming fallback (K/N-blocked grid axis marked
    # "arbitrary" with an f32 VMEM accumulator, or emit_pipeline over HBM
    # weight chunks) for models whose padded weights exceed the VMEM budget.

    # ---- advisory cost estimate ----------------------------------------------
    flops = 2 * M_pad * sum(w.shape[0] * w.shape[1] for (w, _) in prepped_params)
    bytes_accessed = (int(x_p.size) * compute_isz
                      + resident_bytes
                      + M_pad * n_out_pad * out_isz)

    out_p = pl.pallas_call(
        functools.partial(_fused_mlp_kernel,
                          num_layers=num_layers,
                          compute_dtype=compute_dtype),
        out_shape=jax.ShapeDtypeStruct((M_pad, n_out_pad), out_dtype),
        grid=(M_pad // tm,),
        in_specs=in_specs,
        out_specs=out_specs,
        compiler_params=pltpu.CompilerParams(
            dimension_semantics=("parallel",),
            vmem_limit_bytes=vmem_limit),
        cost_estimate=pl.CostEstimate(
            flops=flops, transcendentals=0, bytes_accessed=bytes_accessed),
    )(*flat_inputs)

    return out_p[:M, :out_size]


def init_mlp_params(key, input_size, hidden_layers, out_size, dtype=jnp.float32):
    """Xavier-uniform weights, zero biases (matches MLP.weight_init).

    Weights stored [in, out] (transpose of PyTorch); biases [1, out].
    """
    sizes = [input_size] + list(hidden_layers) + [out_size]
    params = []
    for in_dim, out_dim in zip(sizes[:-1], sizes[1:]):
        key, sub = jax.random.split(key)
        bound = (6.0 / (in_dim + out_dim)) ** 0.5
        w_pt = jax.random.uniform(
            sub, (out_dim, in_dim), minval=-bound, maxval=bound, dtype=dtype)
        params.append((w_pt.T, jnp.zeros((1, out_dim), dtype=dtype)))
    return params


if __name__ == "__main__":
    key = jax.random.PRNGKey(0)
    key_x, key_p = jax.random.split(key)

    batch = 4
    input_size = 16
    hidden_layers = [32, 32]
    out_size = 8

    x = jax.random.normal(key_x, (batch, input_size), dtype=jnp.float32)
    params = init_mlp_params(key_p, input_size, hidden_layers, out_size)

    # Plain-JAX f32 reference of the same forward pass.
    ref = x
    for i, (w, b) in enumerate(params):
        ref = ref @ w + b
        if i < len(params) - 1:
            ref = jnp.maximum(ref, 0.0)

    # --- default fast path: bf16 MXU operands, f32 accumulation -------------
    prepped_bf16 = prepare_mlp_params(params, compute_dtype=jnp.bfloat16)
    fwd_bf16 = jax.jit(lambda xx, pp: mlp_forward(xx, pp, out_size=out_size))
    out_bf16 = fwd_bf16(x, prepped_bf16)
    jax.block_until_ready(out_bf16)
    assert out_bf16.shape == (batch, out_size)
    assert jnp.allclose(out_bf16, ref, atol=5e-2, rtol=5e-2)

    # --- exact f32 path: tight tolerance sanity check ------------------------
    prepped_f32 = prepare_mlp_params(params, compute_dtype=jnp.float32)
    fwd_f32 = jax.jit(lambda xx, pp: mlp_forward(xx, pp, out_size=out_size))
    out_f32 = fwd_f32(x, prepped_f32)
    jax.block_until_ready(out_f32)
    assert out_f32.shape == (batch, out_size)
    assert jnp.allclose(out_f32, ref, atol=1e-5, rtol=1e-5)

    print("KERNEL_OK")
</pallas_src>

<mosaic_0001>
module attributes {stable_mosaic.version = 11 : i64} {
  func.func @_fused_mlp_kernel(%arg0: i32, %arg1: memref<8x128xbf16, #tpu.memory_space<vmem>>, %arg2: memref<128x128xbf16, #tpu.memory_space<vmem>>, %arg3: memref<1x128xf32, #tpu.memory_space<vmem>>, %arg4: memref<128x128xbf16, #tpu.memory_space<vmem>>, %arg5: memref<1x128xf32, #tpu.memory_space<vmem>>, %arg6: memref<128x128xbf16, #tpu.memory_space<vmem>>, %arg7: memref<1x128xf32, #tpu.memory_space<vmem>>, %arg8: memref<8x128xf32, #tpu.memory_space<vmem>>) attributes {dimension_semantics = [#tpu.dimension_semantics<parallel>], iteration_bounds = array<i64: 1>, scalar_prefetch = 0 : i64, scratch_operands = 0 : i64, tpu.core_type = #tpu.core_type<tc>, window_params = [{transform_indices = @transform_0, window_bounds = array<i64: 8, 128>}, {pipeline_mode = #tpu.pipeline_mode<synchronous>, transform_indices = @transform_1, window_bounds = array<i64: 128, 128>}, {pipeline_mode = #tpu.pipeline_mode<synchronous>, transform_indices = @transform_2, window_bounds = array<i64: 1, 128>}, {pipeline_mode = #tpu.pipeline_mode<synchronous>, transform_indices = @transform_3, window_bounds = array<i64: 128, 128>}, {pipeline_mode = #tpu.pipeline_mode<synchronous>, transform_indices = @transform_4, window_bounds = array<i64: 1, 128>}, {pipeline_mode = #tpu.pipeline_mode<synchronous>, transform_indices = @transform_5, window_bounds = array<i64: 128, 128>}, {pipeline_mode = #tpu.pipeline_mode<synchronous>, transform_indices = @transform_6, window_bounds = array<i64: 1, 128>}, {transform_indices = @transform_7, window_bounds = array<i64: 8, 128>}]} {
    %c0 = arith.constant 0 : index
    %c0_0 = arith.constant 0 : index
    %0 = vector.load %arg1[%c0, %c0_0] : memref<8x128xbf16, #tpu.memory_space<vmem>>, vector<8x128xbf16>
    %c0_1 = arith.constant 0 : index
    %c0_2 = arith.constant 0 : index
    %1 = vector.load %arg2[%c0_1, %c0_2] : memref<128x128xbf16, #tpu.memory_space<vmem>>, vector<128x128xbf16>
    %c0_3 = arith.constant 0 : index
    %c0_4 = arith.constant 0 : index
    %2 = vector.load %arg3[%c0_3, %c0_4] : memref<1x128xf32, #tpu.memory_space<vmem>>, vector<1x128xf32>
    %cst = arith.constant dense<0.000000e+00> : vector<8x128xf32>
    %3 = tpu.matmul %0, %1, %cst {dimension_numbers = #tpu.dot_dimension_numbers<[1], [0], [0], [1], [0, 0, 1, 1], [], []>} : vector<8x128xbf16>, vector<128x128xbf16>, vector<8x128xf32> -> vector<8x128xf32>
    %4 = vector.broadcast %2 : vector<1x128xf32> to vector<8x128xf32>
    %5 = arith.addf %3, %4 : vector<8x128xf32>
    %cst_5 = arith.constant 0.000000e+00 : f32
    %6 = vector.broadcast %cst_5 : f32 to vector<8x128xf32>
    %7 = arith.maximumf %5, %6 : vector<8x128xf32>
    %8 = arith.truncf %7 : vector<8x128xf32> to vector<8x128xbf16>
    %c0_6 = arith.constant 0 : index
    %c0_7 = arith.constant 0 : index
    %9 = vector.load %arg4[%c0_6, %c0_7] : memref<128x128xbf16, #tpu.memory_space<vmem>>, vector<128x128xbf16>
    %c0_8 = arith.constant 0 : index
    %c0_9 = arith.constant 0 : index
    %10 = vector.load %arg5[%c0_8, %c0_9] : memref<1x128xf32, #tpu.memory_space<vmem>>, vector<1x128xf32>
    %cst_10 = arith.constant dense<0.000000e+00> : vector<8x128xf32>
    %11 = tpu.matmul %8, %9, %cst_10 {dimension_numbers = #tpu.dot_dimension_numbers<[1], [0], [0], [1], [0, 0, 1, 1], [], []>} : vector<8x128xbf16>, vector<128x128xbf16>, vector<8x128xf32> -> vector<8x128xf32>
    %12 = vector.broadcast %10 : vector<1x128xf32> to vector<8x128xf32>
    %13 = arith.addf %11, %12 : vector<8x128xf32>
    %cst_11 = arith.constant 0.000000e+00 : f32
    %14 = vector.broadcast %cst_11 : f32 to vector<8x128xf32>
    %15 = arith.maximumf %13, %14 : vector<8x128xf32>
    %16 = arith.truncf %15 : vector<8x128xf32> to vector<8x128xbf16>
    %c0_12 = arith.constant 0 : index
    %c0_13 = arith.constant 0 : index
    %17 = vector.load %arg6[%c0_12, %c0_13] : memref<128x128xbf16, #tpu.memory_space<vmem>>, vector<128x128xbf16>
    %c0_14 = arith.constant 0 : index
    %c0_15 = arith.constant 0 : index
    %18 = vector.load %arg7[%c0_14, %c0_15] : memref<1x128xf32, #tpu.memory_space<vmem>>, vector<1x128xf32>
    %cst_16 = arith.constant dense<0.000000e+00> : vector<8x128xf32>
    %19 = tpu.matmul %16, %17, %cst_16 {dimension_numbers = #tpu.dot_dimension_numbers<[1], [0], [0], [1], [0, 0, 1, 1], [], []>} : vector<8x128xbf16>, vector<128x128xbf16>, vector<8x128xf32> -> vector<8x128xf32>
    %20 = vector.broadcast %18 : vector<1x128xf32> to vector<8x128xf32>
    %21 = arith.addf %19, %20 : vector<8x128xf32>
    %c0_17 = arith.constant 0 : index
    %c0_18 = arith.constant 0 : index
    %22 = vector.load %arg8[%c0_17, %c0_18] : memref<8x128xf32, #tpu.memory_space<vmem>>, vector<8x128xf32>
    tpu.vector_store %arg8[%c0_17, %c0_18], %21 {strides = array<i32>} : memref<8x128xf32, #tpu.memory_space<vmem>>, vector<8x128xf32>,
    return
  }
  func.func @transform_0(%arg0: i32) -> (i32, i32) {
    %c0_i32 = arith.constant 0 : i32
    %c0_i32_0 = arith.constant 0 : i32
    return %arg0, %c0_i32 : i32, i32
  }
  func.func @transform_1(%arg0: i32) -> (i32, i32) {
    %c0_i32 = arith.constant 0 : i32
    %c0_i32_0 = arith.constant 0 : i32
    %c0_i32_1 = arith.constant 0 : i32
    return %c0_i32, %c0_i32_0 : i32, i32
  }
  func.func @transform_2(%arg0: i32) -> (i32, i32) {
    %c0_i32 = arith.constant 0 : i32
    %c0_i32_0 = arith.constant 0 : i32
    %c0_i32_1 = arith.constant 0 : i32
    return %c0_i32, %c0_i32_0 : i32, i32
  }
  func.func @transform_3(%arg0: i32) -> (i32, i32) {
    %c0_i32 = arith.constant 0 : i32
    %c0_i32_0 = arith.constant 0 : i32
    %c0_i32_1 = arith.constant 0 : i32
    return %c0_i32, %c0_i32_0 : i32, i32
  }
  func.func @transform_4(%arg0: i32) -> (i32, i32) {
    %c0_i32 = arith.constant 0 : i32
    %c0_i32_0 = arith.constant 0 : i32
    %c0_i32_1 = arith.constant 0 : i32
    return %c0_i32, %c0_i32_0 : i32, i32
  }
  func.func @transform_5(%arg0: i32) -> (i32, i32) {
    %c0_i32 = arith.constant 0 : i32
    %c0_i32_0 = arith.constant 0 : i32
    %c0_i32_1 = arith.constant 0 : i32
    return %c0_i32, %c0_i32_0 : i32, i32
  }
  func.func @transform_6(%arg0: i32) -> (i32, i32) {
    %c0_i32 = arith.constant 0 : i32
    %c0_i32_0 = arith.constant 0 : i32
    %c0_i32_1 = arith.constant 0 : i32
    return %c0_i32, %c0_i32_0 : i32, i32
  }
  func.func @transform_7(%arg0: i32) -> (i32, i32) {
    %c0_i32 = arith.constant 0 : i32
    %c0_i32_0 = arith.constant 0 : i32
    return %arg0, %c0_i32 : i32, i32
  }
}

</mosaic_0001>

<bundles_post_ra>
// kernel: _lambda_.1
= control target key start
LH: loop header
LB: loop body
LE: loop exit
PB: predicated region body
PF: predicated region fallthrough
CT: control target
= control target key end

     0   :  { %12 = vsyncpa [#allocation3], 0  ;;  %s772_s0 = inlined_call_operand.vmem [shape: bf16[8,128], index: 0, kind: input, shape index: {}]   ;;  %s773_s1 = inlined_call_operand.hbm [shape: bf16[128,128], index: 1, kind: input, shape index: {}]   ;;  %s774_s2 = inlined_call_operand.vmem [shape: f32[1,128], index: 2, kind: input, shape index: {}]   ;;  %s775_s3 = inlined_call_operand.hbm [shape: bf16[128,128], index: 3, kind: input, shape index: {}]   ;;  %s776_s4 = inlined_call_operand.vmem [shape: f32[1,128], index: 4, kind: input, shape index: {}]   ;;  %s777_s5 = inlined_call_operand.hbm [shape: bf16[128,128], index: 5, kind: input, shape index: {}]   ;;  %s778_s6 = inlined_call_operand.vmem [shape: f32[1,128], index: 6, kind: input, shape index: {}]   ;;  %s779_s7 = inlined_call_operand.vmem [shape: f32[8,128], index: 7, kind: output, shape index: {}]  }
   0x1   :  { %13 = vsyncpa [#allocation5], 0  ;;  %s628_s24 = smov [#allocation4]   ;;  %s629_s26 = smov [#allocation2]  }
   0x2   :  { %s35_s25 = sshll.u32 %s628_s24, 4  ;;  %s21_s27 = sshll.u32 %s629_s26, 4  ;;  %s36_s25 = int_to_ptr.vmem [resolvable:$true] %s35_s25  ;;  %s675_s27 = int_to_ptr.vmem [resolvable:$true] %s21_s27 }
   0x3   :  { %s558_s30 = scalar_lea.hbm %s775_s3, 1024 }
   0x4   :  { %p559_p0 = scmp.ne.s32.totalorder %s775_s3, %s558_s30  ;;  %p562_p1 = scmp.lt.u32.totalorder %s558_s30, %s775_s3 }
   0x6   :  { %p564_p2 = pnand %p562_p1, %p559_p0 }
   0x8   :  { %567 = shalt.err (!%p564_p2)
}
   0x9   :  { %s568_s12 = scalar_lea.vmem %s36_s25, 1024  ;;  %p573_p4 = scmp.lt.s32.totalorder %s36_s25, %s36_s25 }
   0xa   :  { %p569_p3 = scmp.ne.s32.totalorder %s36_s25, %s568_s12  ;;  %p574_p5 = scmp.lt.s32.totalorder %s568_s12, %s568_s12 }
   0xc   :  { %p575_p6 = por %p574_p5, %p573_p4 }
   0xe   :  { %p576_p7 = pnand %p575_p6, %p569_p3 }
  0x10   :  { %579 = shalt.err (!%p576_p7)
}
  0x11   :  { %s630_s13 = smov 64   ;;  %s631_s14 = smov 4  }
  0x12   :  { %41 = dma.hbm_to_vmem [thread:$0]  %s775_s3, 1024, %s36_s25, [#allocation5], %s630_s13, %s630_s13, %s631_s14  }
  0x13   :  { %s580_s19 = scalar_lea.hbm %s773_s1, 1024 }
  0x14   :  { %p581_p8 = scmp.ne.s32.totalorder %s773_s1, %s580_s19  ;;  %p584_p9 = scmp.lt.u32.totalorder %s580_s19, %s773_s1 }
  0x16   :  { %p586_p10 = pnand %p584_p9, %p581_p8 }
  0x18   :  { %589 = shalt.err (!%p586_p10)
}
  0x19   :  { %s590_s24 = scalar_lea.vmem %s675_s27, 1024  ;;  %p595_p12 = scmp.lt.s32.totalorder %s675_s27, %s675_s27 }
  0x1a   :  { %p591_p11 = scmp.ne.s32.totalorder %s675_s27, %s590_s24  ;;  %p596_p13 = scmp.lt.s32.totalorder %s590_s24, %s590_s24 }
  0x1c   :  { %p597_p0 = por %p596_p13, %p595_p12 }
  0x1e   :  { %p598_p1 = pnand %p597_p0, %p591_p11 }
  0x20   :  { %601 = shalt.err (!%p598_p1)
}
  0x21   :  { %27 = dma.hbm_to_vmem [thread:$0]  %s773_s1, 1024, %s675_s27, [#allocation3], %s630_s13, %s630_s13, %s631_s14  }
  0x22   :  { %s632_s26 = smov [#allocation6]   ;;  %s602_s8 = scalar_lea.hbm %s777_s5, 1024 }
  0x23   :  { %s49_s28 = sshll.u32 %s632_s26, 4  ;;  %p603_p2 = scmp.ne.s32.totalorder %s777_s5, %s602_s8  ;;  %s50_s28 = int_to_ptr.vmem [resolvable:$true] %s49_s28 }
  0x24   :  { %p606_p3 = scmp.lt.u32.totalorder %s602_s8, %s777_s5 }
  0x26   :  { %p608_p4 = pnand %p606_p3, %p603_p2 }
  0x28   :  { %611 = shalt.err (!%p608_p4)
}
  0x29   :  { %s612_s15 = scalar_lea.vmem %s50_s28, 1024  ;;  %p617_p6 = scmp.lt.s32.totalorder %s50_s28, %s50_s28 }
  0x2a   :  { %p613_p5 = scmp.ne.s32.totalorder %s50_s28, %s612_s15  ;;  %p618_p7 = scmp.lt.s32.totalorder %s612_s15, %s612_s15 }
  0x2c   :  { %p619_p8 = por %p618_p7, %p617_p6 }
  0x2e   :  { %p620_p9 = pnand %p619_p8, %p613_p5 }
  0x30   :  { %623 = shalt.err (!%p620_p9)
}
  0x31   :  { %55 = dma.hbm_to_vmem [thread:$0]  %s777_s5, 1024, %s50_s28, [#allocation5], %s630_s13, %s630_s13, %s631_s14  }
  0x32   :  { %624 = dma.done.wait [#allocation3], 1024  }
  0x33   :  { %625 = vsyncadd [#allocation3], 4294966272 }
  0x34   :  { %626 = dma.done.wait [#allocation5], 2048  }
  0x35   :  { %627 = vsyncadd [#allocation5], 4294965248  ;;  %v633_v0 = vmov 0.0   ;;  %vm634_vm0 = vmmov 0   ;;  %v534_v1 = vld [vmem:[#allocation2] sm:$0xff]   ;;  %v535_v2 = vld [vmem:[#allocation2 + $0x8] sm:$0xff]  }
  0x36   :  { %467 = vmatprep.subr.bf16.mxu0 %v633_v0  ;;  %483 = vmatprep.mubr.msk.bf16.mxu0 %vm634_vm0, %v633_v0  ;;  %v536_v3 = vld [vmem:[#allocation2 + $0x10] sm:$0xff]   ;;  %v542_v4 = vld [vmem:[#allocation4] sm:$0xff]   ;;  %v537_v5 = vld [vmem:[#allocation2 + $0x18] sm:$0xff]  }
  0x37   :  { %487 = vmatprep.subr.bf16.mxu1 %v633_v0  ;;  %503 = vmatprep.mubr.msk.bf16.mxu1 %vm634_vm0, %v633_v0  ;;  %v543_v6 = vld [vmem:[#allocation4 + $0x8] sm:$0xff]   ;;  %v538_v7 = vld [vmem:[#allocation2 + $0x20] sm:$0xff]   ;;  %v544_v8 = vld [vmem:[#allocation4 + $0x10] sm:$0xff]  }
  0x38   :  { %468 = vmatpush3.bf16.msra.mxu0 %v534_v1  ;;  %488 = vmatpush3.bf16.msra.mxu1 %v542_v4  ;;  %v539_v9 = vld [vmem:[#allocation2 + $0x28] sm:$0xff]   ;;  %v545_v10 = vld [vmem:[#allocation4 + $0x18] sm:$0xff]   ;;  %v540_v11 = vld [vmem:[#allocation2 + $0x30] sm:$0xff]  }
  0x39   :  { %469 = vmatprep.subr.bf16.mxu0 %v633_v0  ;;  %489 = vmatprep.subr.bf16.mxu1 %v633_v0  ;;  %v546_v12 = vld [vmem:[#allocation4 + $0x20] sm:$0xff]   ;;  %v541_v13 = vld [vmem:[#allocation2 + $0x38] sm:$0xff]   ;;  %v547_v14 = vld [vmem:[#allocation4 + $0x28] sm:$0xff]  }
  0x3a   :  { %v68_v15 = vld [vmem:[%s772_s0] sm:$0xf]  ;;  %v548_v16 = vld [vmem:[#allocation4 + $0x30] sm:$0xff]   ;;  %v549_v17 = vld [vmem:[#allocation4 + $0x38] sm:$0xff]  }
  0x3b   :  { %v550_v18 = vld [vmem:[#allocation6] sm:$0xff]   ;;  %v551_v19 = vld [vmem:[#allocation6 + $0x8] sm:$0xff]   ;;  %v552_v20 = vld [vmem:[#allocation6 + $0x10] sm:$0xff]  }
  0x3c   :  { %470 = vmatpush3.bf16.msra.mxu0 %v535_v2  ;;  %490 = vmatpush3.bf16.msra.mxu1 %v543_v6  ;;  %v553_v21 = vld [vmem:[#allocation6 + $0x18] sm:$0xff]   ;;  %v554_v22 = vld [vmem:[#allocation6 + $0x20] sm:$0xff]   ;;  %v555_v23 = vld [vmem:[#allocation6 + $0x28] sm:$0xff]  }
  0x3d   :  { %471 = vmatprep.subr.bf16.mxu0 %v633_v0  ;;  %491 = vmatprep.subr.bf16.mxu1 %v633_v0  ;;  %v413_v24 = vld [vmem:[%s774_s2] ss:$0 sm:$0xff]  ;;  %v556_v32 = vld [vmem:[#allocation6 + $0x30] sm:$0xff]   ;;  %v557_v33 = vld [vmem:[#allocation6 + $0x38] sm:$0xff]  }
  0x3e   :  { %v422_v34 = vld [vmem:[%s776_s4] ss:$0 sm:$0xff] }
  0x3f   :  { %v431_v42 = vld [vmem:[%s778_s6] ss:$0 sm:$0xff] }
  0x40   :  { %472 = vmatpush3.bf16.msra.mxu0 %v536_v3  ;;  %492 = vmatpush3.bf16.msra.mxu1 %v544_v8 }
  0x41   :  { %473 = vmatprep.subr.bf16.mxu0 %v633_v0  ;;  %493 = vmatprep.subr.bf16.mxu1 %v633_v0 }
  0x44   :  { %474 = vmatpush3.bf16.msra.mxu0 %v537_v5  ;;  %494 = vmatpush3.bf16.msra.mxu1 %v545_v10 }
  0x45   :  { %475 = vmatprep.subr.bf16.mxu0 %v633_v0  ;;  %495 = vmatprep.subr.bf16.mxu1 %v633_v0 }
  0x48   :  { %476 = vmatpush3.bf16.msra.mxu0 %v538_v7  ;;  %496 = vmatpush3.bf16.msra.mxu1 %v546_v12 }
  0x49   :  { %477 = vmatprep.subr.bf16.mxu0 %v633_v0  ;;  %497 = vmatprep.subr.bf16.mxu1 %v633_v0 }
  0x4c   :  { %478 = vmatpush3.bf16.msra.mxu0 %v539_v9  ;;  %498 = vmatpush3.bf16.msra.mxu1 %v547_v14 }
  0x4d   :  { %479 = vmatprep.subr.bf16.mxu0 %v633_v0  ;;  %499 = vmatprep.subr.bf16.mxu1 %v633_v0 }
  0x50   :  { %480 = vmatpush3.bf16.msra.mxu0 %v540_v11  ;;  %500 = vmatpush3.bf16.msra.mxu1 %v548_v16 }
  0x51   :  { %481 = vmatprep.subr.bf16.mxu0 %v633_v0  ;;  %501 = vmatprep.subr.bf16.mxu1 %v633_v0 }
  0x54   :  { %482 = vmatpush3.bf16.msra.mxu0 %v541_v13  ;;  %502 = vmatpush3.bf16.msra.mxu1 %v549_v17 }
  0x55   :  { %507 = vmatprep.subr.bf16.mxu0 %v633_v0 }
  0x57   :  { %484 = vmatmul.mubr.bf16.vlgmr.msra.gmra.mrb[0].mxu0 %v68_v15 }
  0x58   :  { %523 = vmatprep.mubr.msk.bf16.mxu0 %vm634_vm0, %v633_v0  ;;  %508 = vmatpush3.bf16.msra.mxu0 %v550_v18 }
  0x59   :  { %509 = vmatprep.subr.bf16.mxu0 %v633_v0 }
  0x5c   :  { %510 = vmatpush3.bf16.msra.mxu0 %v551_v19 }
  0x5d   :  { %511 = vmatprep.subr.bf16.mxu0 %v633_v0 }
  0x60   :  { %512 = vmatpush3.bf16.msra.mxu0 %v552_v20 }
  0x61   :  { %513 = vmatprep.subr.bf16.mxu0 %v633_v0 }
  0x64   :  { %514 = vmatpush3.bf16.msra.mxu0 %v553_v21 }
  0x65   :  { %515 = vmatprep.subr.bf16.mxu0 %v633_v0 }
  0x68   :  { %516 = vmatpush3.bf16.msra.mxu0 %v554_v22 }
  0x69   :  { %517 = vmatprep.subr.bf16.mxu0 %v633_v0 }
  0x6c   :  { %518 = vmatpush3.bf16.msra.mxu0 %v555_v23 }
  0x6d   :  { %519 = vmatprep.subr.bf16.mxu0 %v633_v0 }
  0x70   :  { %520 = vmatpush3.bf16.msra.mxu0 %v556_v32 }
  0x71   :  { %521 = vmatprep.subr.bf16.mxu0 %v633_v0 }
  0x74   :  { %522 = vmatpush3.bf16.msra.mxu0 %v557_v33 }
 0x12a   :  { %v174_v25 = vpop.f32.mrb[0].mxu0 }
 0x12b   :  { %v175_v26 = vadd.f32 %v413_v24, %v174_v25  ;;  %v485_v27 = vpop.f32.mrb[1].mxu0 }
 0x12c   :  { %v177_v28 = vpop.f32.mrb[2].mxu0 }
 0x12d   :  { %v180_v29 = vmax.f32 %v175_v26, 0.0  ;;  %v486_v30 = vpop.f32.mrb[3].mxu0 }
 0x12f   :  { %v181_v31 = vpack.c.bf16 %v180_v29, %v180_v29 }
 0x131   :  { %504 = vmatmul.mubr.bf16.vlgmr.msra.gmra.mrb[0].mxu1 %v181_v31 }
 0x204   :  { %v287_v35 = vpop.f32.mrb[0].mxu1 }
 0x205   :  { %v288_v36 = vadd.f32 %v422_v34, %v287_v35  ;;  %v505_v37 = vpop.f32.mrb[1].mxu1 }
 0x206   :  { %v290_v38 = vpop.f32.mrb[2].mxu1 }
 0x207   :  { %v293_v39 = vmax.f32 %v288_v36, 0.0  ;;  %v506_v40 = vpop.f32.mrb[3].mxu1 }
 0x209   :  { %v294_v41 = vpack.c.bf16 %v293_v39, %v293_v39 }
 0x20b   :  { %524 = vmatmul.mubr.bf16.vlgmr.msra.gmra.mrb[4].mxu0 %v294_v41 }
 0x2de   :  { %v400_v43 = vpop.f32.mrb[4].mxu0 }
 0x2df   :  { %v401_v44 = vadd.f32 %v431_v42, %v400_v43  ;;  %v525_v45 = vpop.f32.mrb[5].mxu0 }
 0x2e0   :  { %v403_v46 = vpop.f32.mrb[6].mxu0 }
 0x2e1   :  { %406 = vst [vmem:[%s779_s7] sm:$0xff] %v401_v44  ;;  %v526_v47 = vpop.f32.mrb[7].mxu0 }
 0x2e2   :  { %411 = vsyncpa [#allocation3], 1 }
 0x2e3   :  { %412 = vsyncpa [#allocation5], 1 }

</bundles_post_ra>
